<compile_context>
chip_gen: v5e
topology: v5e:2x2
jax: 0.10.0
libtpu: 0.0.40
codegen_flags: <defaults>
</compile_context>

<pallas_src>
import functools
import math

import jax
import jax.numpy as jnp
from jax.experimental import pallas as pl
from jax.experimental.pallas import tpu as pltpu


_LANE = 128        # TPU lane width: pad every feature dim to a multiple of this
_SUBLANE = 8       # f32 sublane width: batch-tile must be a multiple of this
_MAX_TILE_B = 512  # batch-tile cap; sized with headroom for v7x's 64 MiB VMEM


def _round_up(n, m):
    return ((n + m - 1) // m) * m


def _apply_activation(y, activation):
    if activation is None:
        return y
    if activation == "relu":
        return jnp.maximum(y, 0.0)
    if activation == "tanh":
        return jnp.tanh(y)
    if activation == "sigmoid":
        return jax.nn.sigmoid(y)
    raise ValueError(f"unsupported activation: {activation}")


def _stack_kernel(*refs, activations):
    # refs = (x_ref, w0_ref, b0_ref, w1_ref, b1_ref, ..., o_ref)
    num_layers = len(activations)
    x_ref = refs[0]
    o_ref = refs[1 + 2 * num_layers]

    y = x_ref[...]
    for li in range(num_layers):
        w = refs[1 + 2 * li][...]
        b = refs[2 + 2 * li][...]            # (1, out_pad): broadcasts over batch rows
        # MXU matmul with f32 accumulation, then bias + activation on the VPU/EUP.
        y = jnp.dot(y, w, preferred_element_type=jnp.float32)
        y = y + b
        y = _apply_activation(y, activations[li])
    o_ref[...] = y.astype(o_ref.dtype)


@functools.partial(jax.jit, static_argnames=("activations", "out_size"))
def _network_ff_forward(x, padded_params, *, activations, out_size):
    """Fused forward over all layers. x: (B, In); padded_params: ((W_pad, b_pad), ...)."""
    B, in_size = x.shape
    in_pad = padded_params[0][0].shape[0]
    out_pad = padded_params[-1][0].shape[1]

    # Batch tiling: multiple of the f32 sublane, capped for VMEM headroom.
    tile_b = min(_MAX_TILE_B, _round_up(B, _SUBLANE))
    b_pad = _round_up(B, tile_b)

    # Pad batch to a tile multiple and features to the lane-padded first-layer width.
    x_p = jnp.zeros((b_pad, in_pad), x.dtype).at[:B, :in_size].set(x)

    grid = (b_pad // tile_b,)

    in_specs = [pl.BlockSpec((tile_b, in_pad), lambda i: (i, 0))]
    flat_params = []
    for w_p, bias_p in padded_params:
        kin, kout = w_p.shape
        # Full-array blocks; index_map is constant -> weights stay VMEM-resident
        # across all batch tiles.
        in_specs.append(pl.BlockSpec((kin, kout), lambda i: (0, 0)))
        in_specs.append(pl.BlockSpec((1, kout), lambda i: (0, 0)))
        flat_params.extend((w_p, bias_p))

    kernel = functools.partial(_stack_kernel, activations=activations)
    out_p = pl.pallas_call(
        kernel,
        out_shape=jax.ShapeDtypeStruct((b_pad, out_pad), x.dtype),
        grid=grid,
        in_specs=in_specs,
        out_specs=pl.BlockSpec((tile_b, out_pad), lambda i: (i, 0)),
        compiler_params=pltpu.CompilerParams(
            # Batch tiles are independent -> shard across TensorCores on v7x.
            dimension_semantics=("parallel",),
        ),
    )(x_p, *flat_params)

    return out_p[:B, :out_size]


class NetworkFFPallas:
    """JAX/Pallas equivalent of NetworkFF: a stack of Linear(+activation) layers."""

    def __init__(self, layer_sizes, activations, key):
        # layer_sizes: [in, h1, ..., out]; activations: one per layer (len(sizes)-1)
        assert len(layer_sizes) >= 2
        assert len(activations) == len(layer_sizes) - 1
        self.in_size = layer_sizes[0]
        self.out_size = layer_sizes[-1]
        self.activations = tuple(activations)

        self.params = []          # unpadded params (reference / export)
        padded = []               # lane-padded params used by the fused kernel
        for fan_in, fan_out in zip(layer_sizes[:-1], layer_sizes[1:]):
            key, kw, kb = jax.random.split(key, 3)
            # torch.nn.Linear default init: U(-1/sqrt(fan_in), 1/sqrt(fan_in)).
            bound = 1.0 / math.sqrt(fan_in)
            w = jax.random.uniform(kw, (fan_in, fan_out), jnp.float32, -bound, bound)
            b = jax.random.uniform(kb, (fan_out,), jnp.float32, -bound, bound)
            self.params.append((w, b))

            # Zero-pad to 128-lane multiples ONCE here (hoisted out of the call path).
            # Zero weight rows/cols guarantee padded lanes never leak into real outputs.
            in_p = _round_up(fan_in, _LANE)
            out_p = _round_up(fan_out, _LANE)
            w_pad = jnp.zeros((in_p, out_p), jnp.float32).at[:fan_in, :fan_out].set(w)
            b_pad = jnp.zeros((1, out_p), jnp.float32).at[0, :fan_out].set(b)
            padded.append((w_pad, b_pad))
        self.padded_params = tuple(padded)

    def __call__(self, x):
        return _network_ff_forward(
            x, self.padded_params,
            activations=self.activations, out_size=self.out_size)


def _reference_forward(x, params, activations):
    y = x
    for (w, b), act in zip(params, activations):
        y = y @ w + b
        y = _apply_activation(y, act)
    return y


# TODO(synk): build_optimizer (torch optimizer construction) has no Pallas equivalent;
# only the forward pass is implemented here.

if __name__ == "__main__":
    key = jax.random.PRNGKey(0)
    key, kx = jax.random.split(key)

    # Builder(32).add_layer(64, relu).add_layer(64, tanh).add_layer(16).build()
    batch, in_size = 8, 32
    layer_sizes = [in_size, 64, 64, 16]
    activations = ("relu", "tanh", None)

    net = NetworkFFPallas(layer_sizes, activations, key)
    x = jax.random.normal(kx, (batch, in_size), jnp.float32)

    out = jax.block_until_ready(net(x))

    ref = _reference_forward(x, net.params, net.activations)
    assert out.shape == (batch, layer_sizes[-1])
    assert jnp.allclose(out, ref, atol=1e-5, rtol=1e-5), "mismatch vs JAX reference"

    print("KERNEL_OK")
</pallas_src>

<mosaic_0001>
module attributes {stable_mosaic.version = 11 : i64} {
  func.func @_stack_kernel(%arg0: i32, %arg1: memref<8x128xf32, #tpu.memory_space<vmem>>, %arg2: memref<128x128xf32, #tpu.memory_space<vmem>>, %arg3: memref<1x128xf32, #tpu.memory_space<vmem>>, %arg4: memref<128x128xf32, #tpu.memory_space<vmem>>, %arg5: memref<1x128xf32, #tpu.memory_space<vmem>>, %arg6: memref<128x128xf32, #tpu.memory_space<vmem>>, %arg7: memref<1x128xf32, #tpu.memory_space<vmem>>, %arg8: memref<8x128xf32, #tpu.memory_space<vmem>>) attributes {dimension_semantics = [#tpu.dimension_semantics<parallel>], iteration_bounds = array<i64: 1>, scalar_prefetch = 0 : i64, scratch_operands = 0 : i64, tpu.core_type = #tpu.core_type<tc>, window_params = [{transform_indices = @transform_0, window_bounds = array<i64: 8, 128>}, {pipeline_mode = #tpu.pipeline_mode<synchronous>, transform_indices = @transform_1, window_bounds = array<i64: 128, 128>}, {pipeline_mode = #tpu.pipeline_mode<synchronous>, transform_indices = @transform_2, window_bounds = array<i64: 1, 128>}, {pipeline_mode = #tpu.pipeline_mode<synchronous>, transform_indices = @transform_3, window_bounds = array<i64: 128, 128>}, {pipeline_mode = #tpu.pipeline_mode<synchronous>, transform_indices = @transform_4, window_bounds = array<i64: 1, 128>}, {pipeline_mode = #tpu.pipeline_mode<synchronous>, transform_indices = @transform_5, window_bounds = array<i64: 128, 128>}, {pipeline_mode = #tpu.pipeline_mode<synchronous>, transform_indices = @transform_6, window_bounds = array<i64: 1, 128>}, {transform_indices = @transform_7, window_bounds = array<i64: 8, 128>}]} {
    %c0 = arith.constant 0 : index
    %c0_0 = arith.constant 0 : index
    %0 = vector.load %arg1[%c0, %c0_0] : memref<8x128xf32, #tpu.memory_space<vmem>>, vector<8x128xf32>
    %c0_1 = arith.constant 0 : index
    %c0_2 = arith.constant 0 : index
    %1 = vector.load %arg2[%c0_1, %c0_2] : memref<128x128xf32, #tpu.memory_space<vmem>>, vector<128x128xf32>
    %c0_3 = arith.constant 0 : index
    %c0_4 = arith.constant 0 : index
    %2 = vector.load %arg3[%c0_3, %c0_4] : memref<1x128xf32, #tpu.memory_space<vmem>>, vector<1x128xf32>
    %cst = arith.constant dense<0.000000e+00> : vector<8x128xf32>
    %3 = tpu.matmul %0, %1, %cst {dimension_numbers = #tpu.dot_dimension_numbers<[1], [0], [0], [1], [0, 0, 1, 1], [], []>} : vector<8x128xf32>, vector<128x128xf32>, vector<8x128xf32> -> vector<8x128xf32>
    %4 = vector.broadcast %2 : vector<1x128xf32> to vector<8x128xf32>
    %5 = arith.addf %3, %4 : vector<8x128xf32>
    %cst_5 = arith.constant 0.000000e+00 : f32
    %6 = vector.broadcast %cst_5 : f32 to vector<8x128xf32>
    %7 = arith.maximumf %5, %6 : vector<8x128xf32>
    %c0_6 = arith.constant 0 : index
    %c0_7 = arith.constant 0 : index
    %8 = vector.load %arg4[%c0_6, %c0_7] : memref<128x128xf32, #tpu.memory_space<vmem>>, vector<128x128xf32>
    %c0_8 = arith.constant 0 : index
    %c0_9 = arith.constant 0 : index
    %9 = vector.load %arg5[%c0_8, %c0_9] : memref<1x128xf32, #tpu.memory_space<vmem>>, vector<1x128xf32>
    %cst_10 = arith.constant dense<0.000000e+00> : vector<8x128xf32>
    %10 = tpu.matmul %7, %8, %cst_10 {dimension_numbers = #tpu.dot_dimension_numbers<[1], [0], [0], [1], [0, 0, 1, 1], [], []>} : vector<8x128xf32>, vector<128x128xf32>, vector<8x128xf32> -> vector<8x128xf32>
    %11 = vector.broadcast %9 : vector<1x128xf32> to vector<8x128xf32>
    %12 = arith.addf %10, %11 : vector<8x128xf32>
    %13 = math.tanh %12 : vector<8x128xf32>
    %c0_11 = arith.constant 0 : index
    %c0_12 = arith.constant 0 : index
    %14 = vector.load %arg6[%c0_11, %c0_12] : memref<128x128xf32, #tpu.memory_space<vmem>>, vector<128x128xf32>
    %c0_13 = arith.constant 0 : index
    %c0_14 = arith.constant 0 : index
    %15 = vector.load %arg7[%c0_13, %c0_14] : memref<1x128xf32, #tpu.memory_space<vmem>>, vector<1x128xf32>
    %cst_15 = arith.constant dense<0.000000e+00> : vector<8x128xf32>
    %16 = tpu.matmul %13, %14, %cst_15 {dimension_numbers = #tpu.dot_dimension_numbers<[1], [0], [0], [1], [0, 0, 1, 1], [], []>} : vector<8x128xf32>, vector<128x128xf32>, vector<8x128xf32> -> vector<8x128xf32>
    %17 = vector.broadcast %15 : vector<1x128xf32> to vector<8x128xf32>
    %18 = arith.addf %16, %17 : vector<8x128xf32>
    %c0_16 = arith.constant 0 : index
    %c0_17 = arith.constant 0 : index
    %19 = vector.load %arg8[%c0_16, %c0_17] : memref<8x128xf32, #tpu.memory_space<vmem>>, vector<8x128xf32>
    tpu.vector_store %arg8[%c0_16, %c0_17], %18 {strides = array<i32>} : memref<8x128xf32, #tpu.memory_space<vmem>>, vector<8x128xf32>,
    return
  }
  func.func @transform_0(%arg0: i32) -> (i32, i32) {
    %c0_i32 = arith.constant 0 : i32
    %c0_i32_0 = arith.constant 0 : i32
    return %arg0, %c0_i32 : i32, i32
  }
  func.func @transform_1(%arg0: i32) -> (i32, i32) {
    %c0_i32 = arith.constant 0 : i32
    %c0_i32_0 = arith.constant 0 : i32
    %c0_i32_1 = arith.constant 0 : i32
    return %c0_i32, %c0_i32_0 : i32, i32
  }
  func.func @transform_2(%arg0: i32) -> (i32, i32) {
    %c0_i32 = arith.constant 0 : i32
    %c0_i32_0 = arith.constant 0 : i32
    %c0_i32_1 = arith.constant 0 : i32
    return %c0_i32, %c0_i32_0 : i32, i32
  }
  func.func @transform_3(%arg0: i32) -> (i32, i32) {
    %c0_i32 = arith.constant 0 : i32
    %c0_i32_0 = arith.constant 0 : i32
    %c0_i32_1 = arith.constant 0 : i32
    return %c0_i32, %c0_i32_0 : i32, i32
  }
  func.func @transform_4(%arg0: i32) -> (i32, i32) {
    %c0_i32 = arith.constant 0 : i32
    %c0_i32_0 = arith.constant 0 : i32
    %c0_i32_1 = arith.constant 0 : i32
    return %c0_i32, %c0_i32_0 : i32, i32
  }
  func.func @transform_5(%arg0: i32) -> (i32, i32) {
    %c0_i32 = arith.constant 0 : i32
    %c0_i32_0 = arith.constant 0 : i32
    %c0_i32_1 = arith.constant 0 : i32
    return %c0_i32, %c0_i32_0 : i32, i32
  }
  func.func @transform_6(%arg0: i32) -> (i32, i32) {
    %c0_i32 = arith.constant 0 : i32
    %c0_i32_0 = arith.constant 0 : i32
    %c0_i32_1 = arith.constant 0 : i32
    return %c0_i32, %c0_i32_0 : i32, i32
  }
  func.func @transform_7(%arg0: i32) -> (i32, i32) {
    %c0_i32 = arith.constant 0 : i32
    %c0_i32_0 = arith.constant 0 : i32
    return %arg0, %c0_i32 : i32, i32
  }
}

</mosaic_0001>

<bundles_post_ra>
// kernel: _network_ff_forward.1
= control target key start
LH: loop header
LB: loop body
LE: loop exit
PB: predicated region body
PF: predicated region fallthrough
CT: control target
= control target key end

     0   :  { %12 = vsyncpa [#allocation3], 0  ;;  %s399_s0 = inlined_call_operand.vmem [shape: f32[8,128], index: 0, kind: input, shape index: {}]   ;;  %s400_s1 = inlined_call_operand.hbm [shape: f32[128,128], index: 1, kind: input, shape index: {}]   ;;  %s401_s2 = inlined_call_operand.vmem [shape: f32[1,128], index: 2, kind: input, shape index: {}]   ;;  %s402_s3 = inlined_call_operand.hbm [shape: f32[128,128], index: 3, kind: input, shape index: {}]   ;;  %s403_s4 = inlined_call_operand.vmem [shape: f32[1,128], index: 4, kind: input, shape index: {}]   ;;  %s404_s5 = inlined_call_operand.hbm [shape: f32[128,128], index: 5, kind: input, shape index: {}]   ;;  %s405_s6 = inlined_call_operand.vmem [shape: f32[1,128], index: 6, kind: input, shape index: {}]   ;;  %s406_s7 = inlined_call_operand.hbm [shape: f32[8,128], index: 7, kind: output, shape index: {}]  }
   0x1   :  { %13 = vsyncpa [#allocation6], 0 }
   0x2   :  { %14 = vsyncpa [#allocation4], 0  ;;  %s36_s26 = sshll.u32 %s402_s3, 4  ;;  %s329_s27 = smov [#allocation5]   ;;  %s37_s26 = int_to_ptr.hbm [resolvable:$true] %s36_s26 }
   0x3   :  { %s38_s28 = sshll.u32 %s329_s27, 4  ;;  %s21_s8 = sshll.u32 %s400_s1, 4  ;;  %s39_s28 = int_to_ptr.vmem [resolvable:$true] %s38_s28  ;;  %s22_s8 = int_to_ptr.hbm [resolvable:$true] %s21_s8 }
   0x4   :  { %s330_s9 = smov 128   ;;  %s331_s10 = smov 8  }
   0x5   :  { %44 = dma.hbm_to_vmem [thread:$0]  %s37_s26, 2048, %s39_s28, [#allocation6], %s330_s9, %s330_s9, %s331_s10  }
   0x6   :  { %s332_s11 = smov [#allocation2]   ;;  %s51_s15 = sshll.u32 %s404_s5, 4  ;;  %s52_s15 = int_to_ptr.hbm [resolvable:$true] %s51_s15 }
   0x7   :  { %s23_s12 = sshll.u32 %s332_s11, 4  ;;  %s333_s3 = smov [#allocation7]   ;;  %s24_s12 = int_to_ptr.vmem [resolvable:$true] %s23_s12 }
   0x8   :  { %29 = dma.hbm_to_vmem [thread:$0]  %s22_s8, 2048, %s24_s12, [#allocation3], %s330_s9, %s330_s9, %s331_s10  }
   0x9   :  { %s53_s16 = sshll.u32 %s333_s3, 4  ;;  %s54_s16 = int_to_ptr.vmem [resolvable:$true] %s53_s16 }
   0xa   :  { %59 = dma.hbm_to_vmem [thread:$0]  %s52_s15, 2048, %s54_s16, [#allocation6], %s330_s9, %s330_s9, %s331_s10  }
   0xb   :  { %323 = dma.done.wait [#allocation3], 2048  }
   0xc   :  { %324 = vsyncadd [#allocation3], 4294965248 }
   0xd   :  { %325 = dma.done.wait [#allocation6], 4096  }
   0xe   :  { %326 = vsyncadd [#allocation6], 4294963200  ;;  %v90_v0 = vld [vmem:[#allocation2 + $0x78] sm:$0xff]  ;;  %v89_v1 = vld [vmem:[#allocation2 + $0x70] sm:$0xff]  ;;  %s334_s21 = smov [#allocation8]   ;;  %s205_s25 = sshll.u32 %s406_s7, 4  ;;  %s206_s25 = int_to_ptr.hbm [resolvable:$true] %s205_s25 }
   0xf   :  { %95 = vmatpush.msra.mxu0 %v90_v0  ;;  %v88_v2 = vld [vmem:[#allocation2 + $0x68] sm:$0xff]  ;;  %v87_v3 = vld [vmem:[#allocation2 + $0x60] sm:$0xff]  ;;  %v131_v4 = vld [vmem:[#allocation5 + $0x78] sm:$0xff]  ;;  %s203_s22 = sshll.u32 %s334_s21, 4  ;;  %s204_s22 = int_to_ptr.vmem [resolvable:$true] %s203_s22 }
  0x10   :  { %v86_v5 = vld [vmem:[#allocation2 + $0x58] sm:$0xff]  ;;  %136 = vmatpush.msra.mxu1 %v131_v4  ;;  %v130_v6 = vld [vmem:[#allocation5 + $0x70] sm:$0xff]  ;;  %v129_v7 = vld [vmem:[#allocation5 + $0x68] sm:$0xff] }
  0x11   :  { %96 = vmatpush.msra.mxu0 %v89_v1  ;;  %v85_v8 = vld [vmem:[#allocation2 + $0x50] sm:$0xff]  ;;  %v128_v9 = vld [vmem:[#allocation5 + $0x60] sm:$0xff]  ;;  %v84_v10 = vld [vmem:[#allocation2 + $0x48] sm:$0xff] }
  0x12   :  { %137 = vmatpush.msra.mxu1 %v130_v6  ;;  %v127_v11 = vld [vmem:[#allocation5 + $0x58] sm:$0xff]  ;;  %v83_v12 = vld [vmem:[#allocation2 + $0x40] sm:$0xff]  ;;  %v126_v13 = vld [vmem:[#allocation5 + $0x50] sm:$0xff] }
  0x13   :  { %97 = vmatpush.msra.mxu0 %v88_v2  ;;  %v82_v14 = vld [vmem:[#allocation2 + $0x38] sm:$0xff]  ;;  %v125_v15 = vld [vmem:[#allocation5 + $0x48] sm:$0xff]  ;;  %v81_v16 = vld [vmem:[#allocation2 + $0x30] sm:$0xff] }
  0x14   :  { %138 = vmatpush.msra.mxu1 %v129_v7  ;;  %v124_v17 = vld [vmem:[#allocation5 + $0x40] sm:$0xff]  ;;  %v80_v18 = vld [vmem:[#allocation2 + $0x28] sm:$0xff]  ;;  %v123_v19 = vld [vmem:[#allocation5 + $0x38] sm:$0xff] }
  0x15   :  { %98 = vmatpush.msra.mxu0 %v87_v3  ;;  %v79_v20 = vld [vmem:[#allocation2 + $0x20] sm:$0xff]  ;;  %v122_v21 = vld [vmem:[#allocation5 + $0x30] sm:$0xff]  ;;  %v78_v22 = vld [vmem:[#allocation2 + $0x18] sm:$0xff] }
  0x16   :  { %139 = vmatpush.msra.mxu1 %v128_v9  ;;  %v121_v23 = vld [vmem:[#allocation5 + $0x28] sm:$0xff]  ;;  %v77_v24 = vld [vmem:[#allocation2 + $0x10] sm:$0xff]  ;;  %v120_v25 = vld [vmem:[#allocation5 + $0x20] sm:$0xff] }
  0x17   :  { %99 = vmatpush.msra.mxu0 %v86_v5  ;;  %v76_v26 = vld [vmem:[#allocation2 + $0x8] sm:$0xff]  ;;  %v119_v27 = vld [vmem:[#allocation5 + $0x18] sm:$0xff]  ;;  %v75_v28 = vld [vmem:[#allocation2] sm:$0xff] }
  0x18   :  { %140 = vmatpush.msra.mxu1 %v127_v11  ;;  %v74_v29 = vld [vmem:[%s399_s0] sm:$0xff]  ;;  %v118_v30 = vld [vmem:[#allocation5 + $0x10] sm:$0xff]  ;;  %v117_v31 = vld [vmem:[#allocation5 + $0x8] sm:$0xff] }
  0x19   :  { %100 = vmatpush.msra.mxu0 %v85_v8  ;;  %v116_v32 = vld [vmem:[#allocation5] sm:$0xff]  ;;  %v172_v33 = vld [vmem:[#allocation7 + $0x78] sm:$0xff]  ;;  %v171_v34 = vld [vmem:[#allocation7 + $0x70] sm:$0xff] }
  0x1a   :  { %141 = vmatpush.msra.mxu1 %v126_v13  ;;  %177 = vmatpush.msra.mxu2 %v172_v33  ;;  %v170_v35 = vld [vmem:[#allocation7 + $0x68] sm:$0xff]  ;;  %v169_v36 = vld [vmem:[#allocation7 + $0x60] sm:$0xff]  ;;  %v168_v37 = vld [vmem:[#allocation7 + $0x58] sm:$0xff] }
  0x1b   :  { %101 = vmatpush.msra.mxu0 %v84_v10  ;;  %v167_v38 = vld [vmem:[#allocation7 + $0x50] sm:$0xff]  ;;  %v166_v39 = vld [vmem:[#allocation7 + $0x48] sm:$0xff]  ;;  %v165_v40 = vld [vmem:[#allocation7 + $0x40] sm:$0xff] }
  0x1c   :  { %142 = vmatpush.msra.mxu1 %v125_v15  ;;  %178 = vmatpush.msra.mxu2 %v171_v34  ;;  %v164_v41 = vld [vmem:[#allocation7 + $0x38] sm:$0xff]  ;;  %v163_v42 = vld [vmem:[#allocation7 + $0x30] sm:$0xff]  ;;  %v162_v43 = vld [vmem:[#allocation7 + $0x28] sm:$0xff] }
  0x1d   :  { %102 = vmatpush.msra.mxu0 %v83_v12  ;;  %v222_v44 = vld [vmem:[%s401_s2] ss:$0 sm:$0xff]  ;;  %v160_v49 = vld [vmem:[#allocation7 + $0x18] sm:$0xff]  ;;  %v159_v50 = vld [vmem:[#allocation7 + $0x10] sm:$0xff] }
  0x1e   :  { %143 = vmatpush.msra.mxu1 %v124_v17  ;;  %179 = vmatpush.msra.mxu2 %v170_v35  ;;  %v161_v48 = vld [vmem:[#allocation7 + $0x20] sm:$0xff]  ;;  %v158_v51 = vld [vmem:[#allocation7 + $0x8] sm:$0xff] }
  0x1f   :  { %103 = vmatpush.msra.mxu0 %v82_v14  ;;  %v157_v52 = vld [vmem:[#allocation7] sm:$0xff] }
  0x20   :  { %144 = vmatpush.msra.mxu1 %v123_v19  ;;  %180 = vmatpush.msra.mxu2 %v169_v36  ;;  %v223_v53 = vld [vmem:[%s403_s4] ss:$0 sm:$0xff] }
  0x21   :  { %104 = vmatpush.msra.mxu0 %v81_v16  ;;  %v224_v57 = vld [vmem:[%s405_s6] ss:$0 sm:$0xff] }
  0x22   :  { %145 = vmatpush.msra.mxu1 %v122_v21  ;;  %181 = vmatpush.msra.mxu2 %v168_v37 }
  0x23   :  { %105 = vmatpush.msra.mxu0 %v80_v18 }
  0x24   :  { %146 = vmatpush.msra.mxu1 %v121_v23  ;;  %182 = vmatpush.msra.mxu2 %v167_v38 }
  0x25   :  { %106 = vmatpush.msra.mxu0 %v79_v20 }
  0x26   :  { %147 = vmatpush.msra.mxu1 %v120_v25  ;;  %183 = vmatpush.msra.mxu2 %v166_v39 }
  0x27   :  { %107 = vmatpush.msra.mxu0 %v78_v22 }
  0x28   :  { %148 = vmatpush.msra.mxu1 %v119_v27  ;;  %184 = vmatpush.msra.mxu2 %v165_v40 }
  0x29   :  { %108 = vmatpush.msra.mxu0 %v77_v24 }
  0x2a   :  { %149 = vmatpush.msra.mxu1 %v118_v30  ;;  %185 = vmatpush.msra.mxu2 %v164_v41 }
  0x2b   :  { %109 = vmatpush.msra.mxu0 %v76_v26 }
  0x2c   :  { %150 = vmatpush.msra.mxu1 %v117_v31  ;;  %186 = vmatpush.msra.mxu2 %v163_v42 }
  0x2d   :  { %110 = vmatpush.msra.mxu0 %v75_v28 }
  0x2e   :  { %111 = vmatmul.f32.vlgmr.msra.gmra.mxu0 %v74_v29  ;;  %151 = vmatpush.msra.mxu1 %v116_v32 }
  0x2f   :  { %187 = vmatpush.msra.mxu2 %v162_v43 }
  0x31   :  { %188 = vmatpush.msra.mxu2 %v161_v48 }
  0x33   :  { %189 = vmatpush.msra.mxu2 %v160_v49 }
  0x35   :  { %190 = vmatpush.msra.mxu2 %v159_v50 }
  0x37   :  { %191 = vmatpush.msra.mxu2 %v158_v51 }
  0x39   :  { %192 = vmatpush.msra.mxu2 %v157_v52 }
  0xab   :  { %v112_v45 = vpop.f32.mrf.mxu0 }
  0xac   :  { %v113_v46 = vadd.f32 %v222_v44, %v112_v45 }
  0xae   :  { %v115_v47 = vmax.f32 %v113_v46, 0.0 }
  0xb0   :  { %152 = vmatmul.f32.vlgmr.msra.gmra.mxu1 %v115_v47 }
 0x12d   :  { %v153_v54 = vpop.f32.mrf.mxu1 }
 0x12e   :  { %v154_v55 = vadd.f32 %v223_v53, %v153_v54 }
 0x130   :  { %225 = vtanh.f32 %v154_v55 }
 0x136   :  { %v226_v56 = vpop.eup %225 }
 0x137   :  { %193 = vmatmul.f32.vlgmr.msra.gmra.mxu2 %v226_v56 }
 0x1ba   :  { %v194_v58 = vpop.f32.mrf.mxu2 }
 0x1bb   :  { %v195_v59 = vadd.f32 %v224_v57, %v194_v58 }
 0x1bd   :  { %197 = vst [vmem:[#allocation8] sm:$0xff] %v195_v59 }
 0x1be   :  { %208 = dma.vmem_to_hbm [thread:$0]  %s204_s22, 128, %s206_s25, [#allocation4]  }
 0x1bf   :  { %327 = dma.done.wait [#allocation4], 128  }
 0x1c0   :  { %328 = vsyncadd [#allocation4], 4294967168 }
 0x1c1   :  { %213 = vsyncpa [#allocation3], 1 }
 0x1c2   :  { %214 = vsyncpa [#allocation6], 1 }
 0x1c3   :  { %215 = vsyncpa [#allocation4], 1 }

</bundles_post_ra>
